<compile_context>
chip_gen: v5e
topology: v5e:2x2
jax: 0.10.0
libtpu: 0.0.40
codegen_flags: <defaults>
</compile_context>

<pallas_src>
import functools

import jax
import jax.numpy as jnp
import numpy as np
from jax import lax
from jax.experimental import pallas as pl
from jax.experimental.pallas import tpu as pltpu


def _round_up(x, m):
    return ((x + m - 1) // m) * m


def _ocl_kernel(ti_ref, tj_ref,                      # scalar-prefetch (SMEM)
                e_ref, et_ref, sqc_ref, sqr_ref,     # inputs (VMEM tiles)
                labc_ref, labr_ref,
                out_ref,                             # (1,1) f32 in SMEM
                acc_ref,                             # (TM,1) f32 VMEM scratch
                *, margin, num_pairs, tile, batch):
    t = pl.program_id(0)

    @pl.when(t == 0)
    def _():
        acc_ref[...] = jnp.zeros_like(acc_ref)

    ti = ti_ref[t]
    tj = tj_ref[t]

    # Gram matrix on the MXU: (TM, Dp) x (Dp, TN), both operands MXU-native.
    gram = jnp.dot(e_ref[...], et_ref[...], preferred_element_type=jnp.float32)

    # Pairwise squared distances from hoisted norms (clamped for cancellation).
    d2 = jnp.maximum(sqc_ref[...] + sqr_ref[...] - 2.0 * gram, 0.0)   # (TM,TN)
    dist = jnp.sqrt(d2)                                               # EUP slot
    neg = jnp.maximum(margin - dist, 0.0)
    neg = neg * neg
    same = labc_ref[...] == labr_ref[...]                             # (TM,TN)
    per_pair = jnp.where(same, d2, neg)

    # Validity mask: strictly-upper global triangle AND inside the real batch.
    # (col > row and col < batch together imply row < batch.)
    tm, tn = per_pair.shape
    row_g = ti * tile + lax.broadcasted_iota(jnp.int32, (tm, tn), 0)
    col_g = tj * tile + lax.broadcasted_iota(jnp.int32, (tm, tn), 1)
    valid = (col_g > row_g) & (col_g < batch)

    contrib = per_pair * valid.astype(jnp.float32)

    # One lane-axis reduction per tile into the persistent vector accumulator.
    acc_ref[...] += jnp.sum(contrib, axis=-1, keepdims=True)

    @pl.when(t == pl.num_programs(0) - 1)
    def _():
        out_ref[0, 0] = jnp.sum(acc_ref[...]) / num_pairs


def online_contrastive_loss(embeddings, labels, margin, *, tile=None):
    """embeddings: (B, D) float, labels: (B,) int -> scalar float32 loss."""
    B, D = embeddings.shape
    assert B >= 2, "need at least 2 embeddings to form a pair (mean over 0 pairs is NaN)"

    emb = embeddings.astype(jnp.float32)
    labels = labels.astype(jnp.int32)

    # Tile selection: single full-batch tile for small B, 256 (lane/sublane
    # aligned) otherwise.  Multi-tile grids require a 128-multiple tile so the
    # column (lane) axis of every BlockSpec stays aligned.
    if tile is None:
        tile = _round_up(B, 8) if B <= 256 else 256
    assert tile % 8 == 0
    Bp = _round_up(B, tile)
    nb = Bp // tile
    if nb > 1:
        assert tile % 128 == 0, "multi-tile grids need tile % 128 == 0"
    Dp = _round_up(D, 128)

    # Wrapper-side padding / layout prep (all hidden behind the pipeline).
    emb_p = jnp.zeros((Bp, Dp), jnp.float32).at[:B, :D].set(emb)   # (Bp, Dp)
    emb_t = emb_p.T                                                # (Dp, Bp), MXU-native RHS
    sq = jnp.sum(emb_p * emb_p, axis=1)                            # (Bp,)
    sq_col = sq.reshape(Bp, 1)
    sq_row = sq.reshape(1, Bp)
    lab_p = jnp.full((Bp,), -1, jnp.int32).at[:B].set(labels)
    lab_col = lab_p.reshape(Bp, 1)
    lab_row = lab_p.reshape(1, Bp)

    # Triangular tile enumeration: only tiles with tj >= ti.
    ti_list, tj_list = [], []
    for i in range(nb):
        for j in range(i, nb):
            ti_list.append(i)
            tj_list.append(j)
    ti_arr = jnp.asarray(ti_list, dtype=jnp.int32)
    tj_arr = jnp.asarray(tj_list, dtype=jnp.int32)
    n_steps = len(ti_list)

    num_pairs = float(B * (B - 1) // 2)

    kernel = functools.partial(
        _ocl_kernel, margin=float(margin), num_pairs=num_pairs,
        tile=int(tile), batch=int(B))

    grid_spec = pltpu.PrefetchScalarGridSpec(
        num_scalar_prefetch=2,
        grid=(n_steps,),
        in_specs=[
            pl.BlockSpec((tile, Dp), lambda t, ti, tj: (ti[t], 0)),   # row emb tile
            pl.BlockSpec((Dp, tile), lambda t, ti, tj: (0, tj[t])),   # col emb tile (pre-T)
            pl.BlockSpec((tile, 1), lambda t, ti, tj: (ti[t], 0)),    # row norms
            pl.BlockSpec((1, tile), lambda t, ti, tj: (0, tj[t])),    # col norms
            pl.BlockSpec((tile, 1), lambda t, ti, tj: (ti[t], 0)),    # row labels
            pl.BlockSpec((1, tile), lambda t, ti, tj: (0, tj[t])),    # col labels
        ],
        out_specs=pl.BlockSpec(memory_space=pltpu.MemorySpace.SMEM),
        scratch_shapes=[pltpu.VMEM((tile, 1), jnp.float32)],
    )

    out = pl.pallas_call(
        kernel,
        out_shape=jax.ShapeDtypeStruct((1, 1), jnp.float32),
        grid_spec=grid_spec,
        compiler_params=pltpu.CompilerParams(
            dimension_semantics=("arbitrary",)),
    )(ti_arr, tj_arr, emb_p, emb_t, sq_col, sq_row, lab_col, lab_row)
    return out[0, 0]


def _reference_loss(embeddings, labels, margin):
    """Vectorized numpy reference mirroring the PyTorch module (all-pairs selector)."""
    emb = np.asarray(embeddings, dtype=np.float64)
    lab = np.asarray(labels)
    B = emb.shape[0]
    diff = emb[:, None, :] - emb[None, :, :]
    d2 = np.sum(diff * diff, axis=-1)
    dist = np.sqrt(d2)
    same = lab[:, None] == lab[None, :]
    iu = np.triu_indices(B, k=1)
    pos = d2[iu][same[iu]]
    neg = np.maximum(margin - dist[iu][~same[iu]], 0.0) ** 2
    return float(np.mean(np.concatenate([pos, neg])))


if __name__ == "__main__":
    key = jax.random.PRNGKey(0)
    k1, k2, k3, k4 = jax.random.split(key, 4)
    margin = 1.0

    # Case 1: tiny shapes (single-tile fast path).
    B1, D1 = 8, 32
    emb1 = jax.random.normal(k1, (B1, D1), dtype=jnp.float32)
    lab1 = jax.random.randint(k2, (B1,), 0, 3, dtype=jnp.int32)
    loss1 = jax.block_until_ready(online_contrastive_loss(emb1, lab1, margin))
    ref1 = _reference_loss(emb1, lab1, margin)
    assert abs(float(loss1) - ref1) < 1e-3 * max(1.0, abs(ref1)), (float(loss1), ref1)

    # Case 2: exercises the triangular multi-tile grid, padding mask and
    # accumulator init/epilogue (B=200 padded to 256, tile=128 -> 3 grid steps).
    B2, D2 = 200, 48
    emb2 = jax.random.normal(k3, (B2, D2), dtype=jnp.float32)
    lab2 = jax.random.randint(k4, (B2,), 0, 5, dtype=jnp.int32)
    loss2 = jax.block_until_ready(
        online_contrastive_loss(emb2, lab2, margin, tile=128))
    ref2 = _reference_loss(emb2, lab2, margin)
    assert abs(float(loss2) - ref2) < 1e-3 * max(1.0, abs(ref2)), (float(loss2), ref2)

    print("KERNEL_OK")
</pallas_src>

<mosaic_0001>
module attributes {stable_mosaic.version = 11 : i64} {
  func.func @_ocl_kernel(%arg0: i32, %arg1: memref<1xi32, #tpu.memory_space<smem>>, %arg2: memref<1xi32, #tpu.memory_space<smem>>, %arg3: memref<8x128xf32, #tpu.memory_space<vmem>>, %arg4: memref<128x8xf32, #tpu.memory_space<vmem>>, %arg5: memref<8x1xf32, #tpu.memory_space<vmem>>, %arg6: memref<1x8xf32, #tpu.memory_space<vmem>>, %arg7: memref<8x1xi32, #tpu.memory_space<vmem>>, %arg8: memref<1x8xi32, #tpu.memory_space<vmem>>, %arg9: memref<1x1xf32, #tpu.memory_space<smem>>, %arg10: memref<8x1xf32, #tpu.memory_space<vmem>>) attributes {dimension_semantics = [#tpu.dimension_semantics<arbitrary>], iteration_bounds = array<i64: 1>, scalar_prefetch = 2 : i64, scratch_operands = 1 : i64, tpu.core_type = #tpu.core_type<tc>, window_params = [{transform_indices = @transform_0, window_bounds = array<i64: 8, 128>}, {transform_indices = @transform_1, window_bounds = array<i64: 128, 8>}, {transform_indices = @transform_2, window_bounds = array<i64: 8, 1>}, {transform_indices = @transform_3, window_bounds = array<i64: 1, 8>}, {transform_indices = @transform_4, window_bounds = array<i64: 8, 1>}, {transform_indices = @transform_5, window_bounds = array<i64: 1, 8>}, {transform_indices = @transform_6, window_bounds = array<i64: 1, 1>}]} {
    %c0_i32 = arith.constant 0 : i32
    %0 = arith.cmpi eq, %arg0, %c0_i32 : i32
    %1 = arith.extui %0 : i1 to i32
    %c0_i32_0 = arith.constant 0 : i32
    %2 = arith.cmpi ne, %1, %c0_i32_0 : i32
    scf.if %2 {
      %cst_25 = arith.constant 0.000000e+00 : f32
      %55 = vector.broadcast %cst_25 : f32 to vector<8x1xf32>
      %c0_26 = arith.constant 0 : index
      %c0_27 = arith.constant 0 : index
      %56 = vector.load %arg10[%c0_26, %c0_27] : memref<8x1xf32, #tpu.memory_space<vmem>>, vector<8x1xf32>
      tpu.vector_store %arg10[%c0_26, %c0_27], %55 {strides = array<i32>} : memref<8x1xf32, #tpu.memory_space<vmem>>, vector<8x1xf32>,
    } else {
    }
    %3 = arith.index_cast %arg0 : i32 to index
    %4 = memref.load %arg1[%3] : memref<1xi32, #tpu.memory_space<smem>>
    %5 = arith.index_cast %arg0 : i32 to index
    %6 = memref.load %arg2[%5] : memref<1xi32, #tpu.memory_space<smem>>
    %c0 = arith.constant 0 : index
    %c0_1 = arith.constant 0 : index
    %7 = vector.load %arg3[%c0, %c0_1] : memref<8x128xf32, #tpu.memory_space<vmem>>, vector<8x128xf32>
    %c0_2 = arith.constant 0 : index
    %c0_3 = arith.constant 0 : index
    %8 = vector.load %arg4[%c0_2, %c0_3] : memref<128x8xf32, #tpu.memory_space<vmem>>, vector<128x8xf32>
    %cst = arith.constant dense<0.000000e+00> : vector<8x8xf32>
    %9 = tpu.matmul %7, %8, %cst {dimension_numbers = #tpu.dot_dimension_numbers<[1], [0], [0], [1], [0, 0, 1, 1], [], []>} : vector<8x128xf32>, vector<128x8xf32>, vector<8x8xf32> -> vector<8x8xf32>
    %c0_4 = arith.constant 0 : index
    %c0_5 = arith.constant 0 : index
    %10 = vector.load %arg5[%c0_4, %c0_5] : memref<8x1xf32, #tpu.memory_space<vmem>>, vector<8x1xf32>
    %c0_6 = arith.constant 0 : index
    %c0_7 = arith.constant 0 : index
    %11 = vector.load %arg6[%c0_6, %c0_7] : memref<1x8xf32, #tpu.memory_space<vmem>>, vector<1x8xf32>
    %12 = vector.broadcast %10 : vector<8x1xf32> to vector<8x8xf32>
    %13 = vector.broadcast %11 : vector<1x8xf32> to vector<8x8xf32>
    %14 = arith.addf %12, %13 : vector<8x8xf32>
    %cst_8 = arith.constant 2.000000e+00 : f32
    %15 = vector.broadcast %cst_8 : f32 to vector<8x8xf32>
    %16 = arith.mulf %15, %9 : vector<8x8xf32>
    %17 = arith.subf %14, %16 : vector<8x8xf32>
    %cst_9 = arith.constant 0.000000e+00 : f32
    %18 = vector.broadcast %cst_9 : f32 to vector<8x8xf32>
    %19 = arith.maximumf %17, %18 : vector<8x8xf32>
    %20 = math.sqrt %19 : vector<8x8xf32>
    %cst_10 = arith.constant 1.000000e+00 : f32
    %21 = vector.broadcast %cst_10 : f32 to vector<8x8xf32>
    %22 = arith.subf %21, %20 : vector<8x8xf32>
    %cst_11 = arith.constant 0.000000e+00 : f32
    %23 = vector.broadcast %cst_11 : f32 to vector<8x8xf32>
    %24 = arith.maximumf %22, %23 : vector<8x8xf32>
    %25 = arith.mulf %24, %24 : vector<8x8xf32>
    %c0_12 = arith.constant 0 : index
    %c0_13 = arith.constant 0 : index
    %26 = vector.load %arg7[%c0_12, %c0_13] : memref<8x1xi32, #tpu.memory_space<vmem>>, vector<8x1xi32>
    %c0_14 = arith.constant 0 : index
    %c0_15 = arith.constant 0 : index
    %27 = vector.load %arg8[%c0_14, %c0_15] : memref<1x8xi32, #tpu.memory_space<vmem>>, vector<1x8xi32>
    %28 = vector.broadcast %26 : vector<8x1xi32> to vector<8x8xi32>
    %29 = vector.broadcast %27 : vector<1x8xi32> to vector<8x8xi32>
    %30 = arith.cmpi eq, %28, %29 : vector<8x8xi32>
    %31 = arith.select %30, %19, %25 : vector<8x8xi1>, vector<8x8xf32>
    %c8_i32 = arith.constant 8 : i32
    %32 = arith.muli %4, %c8_i32 : i32
    %33 = tpu.iota {dimensions = array<i32: 0>} : vector<8x8xi32>
    %34 = vector.broadcast %32 : i32 to vector<8x8xi32>
    %35 = arith.addi %34, %33 : vector<8x8xi32>
    %c8_i32_16 = arith.constant 8 : i32
    %36 = arith.muli %6, %c8_i32_16 : i32
    %37 = tpu.iota {dimensions = array<i32: 1>} : vector<8x8xi32>
    %38 = vector.broadcast %36 : i32 to vector<8x8xi32>
    %39 = arith.addi %38, %37 : vector<8x8xi32>
    %40 = arith.cmpi sgt, %39, %35 : vector<8x8xi32>
    %c8_i32_17 = arith.constant 8 : i32
    %41 = vector.broadcast %c8_i32_17 : i32 to vector<8x8xi32>
    %42 = arith.cmpi slt, %39, %41 : vector<8x8xi32>
    %43 = arith.andi %40, %42 : vector<8x8xi1>
    %44 = arith.extui %43 : vector<8x8xi1> to vector<8x8xi32>
    %45 = arith.sitofp %44 : vector<8x8xi32> to vector<8x8xf32>
    %46 = arith.mulf %31, %45 : vector<8x8xf32>
    %c0_18 = arith.constant 0 : index
    %c0_19 = arith.constant 0 : index
    %47 = vector.load %arg10[%c0_18, %c0_19] : memref<8x1xf32, #tpu.memory_space<vmem>>, vector<8x1xf32>
    %cst_20 = arith.constant dense<0.000000e+00> : vector<8xf32>
    %48 = vector.multi_reduction <add>, %46, %cst_20 [1] : vector<8x8xf32> to vector<8xf32>
    %49 = vector.shape_cast %48 : vector<8xf32> to vector<8x1xf32>
    %50 = arith.addf %47, %49 : vector<8x1xf32>
    %c0_21 = arith.constant 0 : index
    %c0_22 = arith.constant 0 : index
    %51 = vector.load %arg10[%c0_21, %c0_22] : memref<8x1xf32, #tpu.memory_space<vmem>>, vector<8x1xf32>
    tpu.vector_store %arg10[%c0_21, %c0_22], %50 {strides = array<i32>} : memref<8x1xf32, #tpu.memory_space<vmem>>, vector<8x1xf32>,
    %c0_i32_23 = arith.constant 0 : i32
    %52 = arith.cmpi eq, %arg0, %c0_i32_23 : i32
    %53 = arith.extui %52 : i1 to i32
    %c0_i32_24 = arith.constant 0 : i32
    %54 = arith.cmpi ne, %53, %c0_i32_24 : i32
    scf.if %54 {
      %c0_25 = arith.constant 0 : index
      %c0_26 = arith.constant 0 : index
      %55 = vector.load %arg10[%c0_25, %c0_26] : memref<8x1xf32, #tpu.memory_space<vmem>>, vector<8x1xf32>
      %56 = vector.shape_cast %55 : vector<8x1xf32> to vector<1x8x1xf32>
      %cst_27 = arith.constant dense<0.000000e+00> : vector<1xf32>
      %57 = vector.multi_reduction <add>, %56, %cst_27 [1, 2] : vector<1x8x1xf32> to vector<1xf32>
      %58 = vector.shape_cast %57 : vector<1xf32> to vector<1x1x1xf32>
      %59 = vector.extract %58[0, 0, 0] : f32 from vector<1x1x1xf32>
      %cst_28 = arith.constant 2.800000e+01 : f32
      %60 = arith.divf %59, %cst_28 : f32
      %c0_29 = arith.constant 0 : index
      %c0_30 = arith.constant 0 : index
      %61 = memref.load %arg9[%c0_29, %c0_30] : memref<1x1xf32, #tpu.memory_space<smem>>
      memref.store %60, %arg9[%c0_29, %c0_30] : memref<1x1xf32, #tpu.memory_space<smem>>
    } else {
    }
    return
  }
  func.func @transform_0(%arg0: i32, %arg1: memref<1xi32, #tpu.memory_space<smem>>, %arg2: memref<1xi32, #tpu.memory_space<smem>>) -> (i32, i32) {
    %0 = arith.index_cast %arg0 : i32 to index
    %1 = memref.load %arg1[%0] : memref<1xi32, #tpu.memory_space<smem>>
    %c0_i32 = arith.constant 0 : i32
    %c0_i32_0 = arith.constant 0 : i32
    return %1, %c0_i32 : i32, i32
  }
  func.func @transform_1(%arg0: i32, %arg1: memref<1xi32, #tpu.memory_space<smem>>, %arg2: memref<1xi32, #tpu.memory_space<smem>>) -> (i32, i32) {
    %0 = arith.index_cast %arg0 : i32 to index
    %1 = memref.load %arg2[%0] : memref<1xi32, #tpu.memory_space<smem>>
    %c0_i32 = arith.constant 0 : i32
    %c0_i32_0 = arith.constant 0 : i32
    return %c0_i32, %1 : i32, i32
  }
  func.func @transform_2(%arg0: i32, %arg1: memref<1xi32, #tpu.memory_space<smem>>, %arg2: memref<1xi32, #tpu.memory_space<smem>>) -> (i32, i32) {
    %0 = arith.index_cast %arg0 : i32 to index
    %1 = memref.load %arg1[%0] : memref<1xi32, #tpu.memory_space<smem>>
    %c0_i32 = arith.constant 0 : i32
    %c0_i32_0 = arith.constant 0 : i32
    return %1, %c0_i32 : i32, i32
  }
  func.func @transform_3(%arg0: i32, %arg1: memref<1xi32, #tpu.memory_space<smem>>, %arg2: memref<1xi32, #tpu.memory_space<smem>>) -> (i32, i32) {
    %0 = arith.index_cast %arg0 : i32 to index
    %1 = memref.load %arg2[%0] : memref<1xi32, #tpu.memory_space<smem>>
    %c0_i32 = arith.constant 0 : i32
    %c0_i32_0 = arith.constant 0 : i32
    return %c0_i32, %1 : i32, i32
  }
  func.func @transform_4(%arg0: i32, %arg1: memref<1xi32, #tpu.memory_space<smem>>, %arg2: memref<1xi32, #tpu.memory_space<smem>>) -> (i32, i32) {
    %0 = arith.index_cast %arg0 : i32 to index
    %1 = memref.load %arg1[%0] : memref<1xi32, #tpu.memory_space<smem>>
    %c0_i32 = arith.constant 0 : i32
    %c0_i32_0 = arith.constant 0 : i32
    return %1, %c0_i32 : i32, i32
  }
  func.func @transform_5(%arg0: i32, %arg1: memref<1xi32, #tpu.memory_space<smem>>, %arg2: memref<1xi32, #tpu.memory_space<smem>>) -> (i32, i32) {
    %0 = arith.index_cast %arg0 : i32 to index
    %1 = memref.load %arg2[%0] : memref<1xi32, #tpu.memory_space<smem>>
    %c0_i32 = arith.constant 0 : i32
    %c0_i32_0 = arith.constant 0 : i32
    return %c0_i32, %1 : i32, i32
  }
  func.func @transform_6(%arg0: i32, %arg1: memref<1xi32, #tpu.memory_space<smem>>, %arg2: memref<1xi32, #tpu.memory_space<smem>>) -> (i32, i32) {
    %c0_i32 = arith.constant 0 : i32
    %c0_i32_0 = arith.constant 0 : i32
    %c0_i32_1 = arith.constant 0 : i32
    return %c0_i32, %c0_i32_0 : i32, i32
  }
}

</mosaic_0001>

<bundles_post_ra>
// kernel: tpu_custom_call.1
= control target key start
LH: loop header
LB: loop body
LE: loop exit
PB: predicated region body
PF: predicated region fallthrough
CT: control target
= control target key end

     0   :  { %s465_s0 = inlined_call_operand.<no memory space> [shape: s32[1], index: 0, kind: input, shape index: {}]   ;;  %s466_s1 = inlined_call_operand.<no memory space> [shape: s32[1], index: 1, kind: input, shape index: {}]   ;;  %s467_s2 = inlined_call_operand.vmem [shape: f32[8,128], index: 2, kind: input, shape index: {}]   ;;  %s468_s3 = inlined_call_operand.vmem [shape: f32[128,8], index: 3, kind: input, shape index: {}]   ;;  %s469_s4 = inlined_call_operand.vmem [shape: f32[8,1], index: 4, kind: input, shape index: {}]   ;;  %s470_s5 = inlined_call_operand.vmem [shape: f32[1,8], index: 5, kind: input, shape index: {}]   ;;  %s471_s6 = inlined_call_operand.vmem [shape: s32[8,1], index: 6, kind: input, shape index: {}]   ;;  %s472_s7 = inlined_call_operand.vmem [shape: s32[1,8], index: 7, kind: input, shape index: {}]   ;;  %s473_s8 = inlined_call_operand.hbm [shape: f32[1,1], index: 8, kind: output, shape index: {}]  }
   0x1   :  { %p97_p0 = scmp.lt.s32.totalorder %s466_s1, 0  ;;  %p91_p1 = scmp.lt.s32.totalorder %s465_s0, 0 }
   0x2   :  { %15 = vsyncpa [#allocation7], 0  ;;  %v336_v2 = vmov 0   ;;  %vm128_vm0 = vcmask 7168   ;;  %v337_v27 = vmov 0.0   ;;  %v207_v30 = vlaneseq  ;;  %s305_s16 = sshll.u32 %s466_s1, 3 }
   0x3   :  { %s394_s11 = scalar_select %p97_p0, %s466_s1, 0  ;;  %315 = vset.pattern.permute.xlu0 %v336_v2  ;;  %129 = vst.msk [vmem:[#allocation2] sm:$0xff] %vm128_vm0, %v337_v27  ;;  %v214_v36 = vstv %s305_s16  ;;  %vm223_vm7 = vcmask 64512   ;;  %v338_v59 = vmov 28.0  }
   0x4   :  { %s92_s14 = scalar_select %p91_p1, %s465_s0, 0  ;;  %v208_v33 = vshrl.u32 %v207_v30, 7  ;;  %v213_v34 = vand.u32 127, %v207_v30 }
   0x5   :  { %s301_s15 = sshll.u32 %s394_s11, 3  ;;  %s111_s18 = scalar_lea.vmem %s470_s5, %s394_s11 }
   0x6   :  { %s407_s21 = scalar_lea.vmem %s468_s3, %s301_s15  ;;  %s411_s22 = sshll.u32 %s92_s14, 3  ;;  %v316_v20 = vld [vmem:[%s111_s18] ss:$0 sm:$0xff]  ;;  %v215_v40 = vadd.s32 %v214_v36, %v213_v34 }
   0x7   :  { %v148_v0 = vld [vmem:[%s407_s21 + $0x78] sm:$0xff]  ;;  %v147_v1 = vld [vmem:[%s407_s21 + $0x70] sm:$0xff]  ;;  %v146_v3 = vld [vmem:[%s407_s21 + $0x68] sm:$0xff]  ;;  %s106_s24 = scalar_lea.vmem %s469_s4, %s411_s22  ;;  %s122_s27 = scalar_lea.vmem %s472_s7, %s394_s11 }
   0x8   :  { %149 = vmatpush.msra.mxu0 %v148_v0  ;;  %v145_v4 = vld [vmem:[%s407_s21 + $0x60] sm:$0xff]  ;;  %v144_v6 = vld [vmem:[%s407_s21 + $0x58] sm:$0xff]  ;;  %v143_v7 = vld [vmem:[%s407_s21 + $0x50] sm:$0xff]  ;;  %s117_s4 = scalar_lea.vmem %s471_s6, %s411_s22  ;;  %s94_s9 = scalar_lea.vmem %s467_s2, %s411_s22  ;;  %vm217_vm4 = vcmp.lt.s32.totalorder %v215_v40, 8 }
   0x9   :  { %v169_v5 = vld [vmem:[%s106_s24] sm:$0xff]  ;;  %v142_v8 = vld [vmem:[%s407_s21 + $0x48] sm:$0xff]  ;;  %v140_v11 = vld [vmem:[%s407_s21 + $0x38] sm:$0xff]  ;;  %s304_s5 = sshll.u32 %s465_s0, 3  ;;  %s260_s17 = sshll.u32 %s473_s8, 4  ;;  %s261_s17 = int_to_ptr.hbm [resolvable:$true] %s260_s17 }
   0xa   :  { %150 = vmatpush.msra.mxu0 %v147_v1  ;;  %173 = vperm.xlu0 %315, %v169_v5   ;;  %v198_v9 = vld [vmem:[%s117_s4] sm:$0xff]  ;;  %v139_v12 = vld [vmem:[%s407_s21 + $0x30] sm:$0xff]  ;;  %v138_v13 = vld [vmem:[%s407_s21 + $0x28] sm:$0xff]  ;;  %v209_v35 = vstv %s304_s5 }
   0xb   :  { %v141_v10 = vld [vmem:[%s407_s21 + $0x40] sm:$0xff]  ;;  %v136_v15 = vld [vmem:[%s407_s21 + $0x18] sm:$0xff]  ;;  %v135_v16 = vld [vmem:[%s407_s21 + $0x10] sm:$0xff]  ;;  %v210_v39 = vadd.s32 %v209_v35, %v208_v33 }
   0xc   :  { %151 = vmatpush.msra.mxu0 %v146_v3  ;;  %v137_v14 = vld [vmem:[%s407_s21 + $0x20] sm:$0xff]  ;;  %v134_v17 = vld [vmem:[%s407_s21 + $0x8] sm:$0xff] }
   0xd   :  { %v133_v18 = vld [vmem:[%s407_s21] sm:$0xff]  ;;  %vm216_vm3 = vcmp.gt.s32.totalorder %v215_v40, %v210_v39  ;;  %s339_s21 = smov [#allocation6]  }
   0xe   :  { %152 = vmatpush.msra.mxu0 %v145_v4  ;;  %v132_v19 = vld [vmem:[%s94_s9] sm:$0xff]  ;;  %vm218_vm5 = vmand %vm216_vm3, %vm217_vm4 }
   0xf   :  { %v317_v46 = vld [vmem:[%s122_s27] ss:$0 sm:$0xff]  ;;  %v306_v50 = vsel %vm218_vm5, 1.0, %v337_v27 }
  0x10   :  { %153 = vmatpush.msra.mxu0 %v144_v6  ;;  %v222_v54 = vld [vmem:[#allocation2] sm:$0xff] }
  0x12   :  { %154 = vmatpush.msra.mxu0 %v143_v7  ;;  %201 = vperm.xlu0 %315, %v198_v9  }
  0x14   :  { %155 = vmatpush.msra.mxu0 %v142_v8 }
  0x16   :  { %156 = vmatpush.msra.mxu0 %v141_v10 }
  0x18   :  { %157 = vmatpush.msra.mxu0 %v140_v11 }
  0x1a   :  { %158 = vmatpush.msra.mxu0 %v139_v12 }
  0x1c   :  { %159 = vmatpush.msra.mxu0 %v138_v13 }
  0x1e   :  { %160 = vmatpush.msra.mxu0 %v137_v14 }
  0x20   :  { %161 = vmatpush.msra.mxu0 %v136_v15 }
  0x22   :  { %162 = vmatpush.msra.mxu0 %v135_v16 }
  0x24   :  { %163 = vmatpush.msra.mxu0 %v134_v17 }
  0x26   :  { %164 = vmatpush.msra.mxu0 %v133_v18 }
  0x27   :  { %165 = vmatmul.f32.vlgmr.msra.gmra.mxu0 %v132_v19 }
  0x7c   :  { %v174_v21 = vpop.permute.xlu0 %173 }
  0x7d   :  { %v179_v22 = vadd.f32 %v316_v20, %v174_v21 }
  0x84   :  { %v202_v47 = vpop.permute.xlu0 %201 }
  0x85   :  { %vm204_vm6 = vcmp.eq.s32.totalorder %v202_v47, %v317_v46 }
  0xa4   :  { %v166_v23 = vpop.f32.mrf.mxu0 }
  0xa5   :  { %v180_v24 = vmul.f32 2.0, %v166_v23 }
  0xa7   :  { %v181_v25 = vsub.f32 %v179_v22, %v180_v24 }
  0xa9   :  { %v182_v26 = vmax.f32 %v181_v25, 0.0 }
  0xab   :  { %318 = vrsqrt.f32 %v182_v26  ;;  %vm190_vm1 = vcmp.eq.f32.partialorder %v182_v26, inf  ;;  %v193_v42 = vand.u32 2147483648, %v182_v26  ;;  %vm192_vm2 = vcmp.eq.f32.partialorder %v182_v26, 0.0 }
  0xac   :  { %320 = vrcp.f32 %v338_v59 }
  0xb1   :  { %v319_v28 = vpop.eup %318 }
  0xb2   :  { %v184_v29 = vmul.f32 %v319_v28, %v182_v26  ;;  %v321_v60 = vpop.eup %320 }
  0xb3   :  { %v245_v61 = vmul.f32 28.0, %v321_v60  ;;  %vm249_vm8 = vweird.f32 %v321_v60 }
  0xb4   :  { %v185_v31 = vmul.f32 %v319_v28, %v184_v29 }
  0xb5   :  { %v246_v62 = vsub.f32 1.0, %v245_v61 }
  0xb6   :  { %v186_v32 = vmul.f32 0.5, %v185_v31 }
  0xb7   :  { %v247_v2 = vmul.f32 %v321_v60, %v246_v62 }
  0xb8   :  { %v187_v37 = vsub.f32 1.5, %v186_v32 }
  0xb9   :  { %v248_v5 = vadd.f32 %v321_v60, %v247_v2 }
  0xba   :  { %v188_v38 = vmul.f32 %v319_v28, %v187_v37 }
  0xbb   :  { %v250_v8 = vsel %vm249_vm8, %v321_v60, %v248_v5 }
  0xbc   :  { %v189_v41 = vmul.f32 %v188_v38, %v182_v26 }
  0xbe   :  { %v191_v43 = vsel %vm190_vm1, %v182_v26, %v189_v41 }
  0xbf   :  { %v194_v44 = vsel %vm192_vm2, %v193_v42, %v191_v43 }
  0xc0   :  { %v195_v45 = vsub.f32 1.0, %v194_v44 }
  0xc2   :  { %v196_v48 = vmax.f32 %v195_v45, 0.0 }
  0xc4   :  { %v197_v49 = vmul.f32 %v196_v48, %v196_v48 }
  0xc6   :  { %v205_v51 = vsel %vm204_vm6, %v182_v26, %v197_v49 }
  0xc7   :  { %v221_v52 = vmul.f32 %v306_v50, %v205_v51 }
  0xc9   :  { %v224_v53 = vsel %vm223_vm7, %v221_v52, 0.0 }
  0xca   :  { %225 = vadd.xlane.f32.xlu1 %v224_v53 }
 0x13d   :  { %v226_v55 = vpop.xlane.xlu1 %225 }
 0x13e   :  { %v227_v56 = vadd.f32 %v226_v55, %v222_v54 }
 0x140   :  { %229 = vst.msk [vmem:[#allocation2] sm:$0xff] %vm128_vm0, %v227_v56 }
 0x147   :  { %v233_v57 = vld [vmem:[#allocation2] sm:$0xff] }
 0x148   :  { %v234_v58 = vsel %vm128_vm0, %v233_v57, 0.0 }
 0x149   :  { %235 = vadd.xlane.f32.xlu1 %v234_v58 }
 0x1bc   :  { %v236_v63 = vpop.xlane.xlu1 %235 }
 0x1bd   :  { %v237_v0 = vrot.slane %v236_v63, 4 }
 0x1bf   :  { %v238_v1 = vadd.f32 %v237_v0, %v236_v63 }
 0x1c1   :  { %v239_v3 = vrot.slane %v238_v1, 2 }
 0x1c3   :  { %v240_v4 = vadd.f32 %v239_v3, %v238_v1 }
 0x1c5   :  { %v241_v6 = vrot.slane %v240_v4, 1 }
 0x1c7   :  { %v242_v7 = vadd.f32 %v241_v6, %v240_v4 }
 0x1c9   :  { %307 = vpush %v242_v7 }
 0x1ca   :  { %309 = vpush %v250_v8 }
 0x1fa   :  { %s308_s18 = spop %307 }
 0x1fb   :  { %s310_s19 = spop %309 }
 0x1fc   :  { %s252_s20 = smul.f32 %s310_s19, %s308_s18 }
 0x1fe   :  { %254 = sst [smem:[#allocation6]] %s252_s20 }
 0x1ff   :  { %263 = dma.smem_to_hbm %s339_s21, 16, %s261_s17, [#allocation7]  }
 0x200   :  { %334 = dma.done.wait [#allocation7], 16  }
 0x201   :  { %335 = vsyncadd [#allocation7], 4294967280 }
 0x202   :  { %268 = sfence }
 0x203   :  { %269 = vsyncpa [#allocation7], 1 }

</bundles_post_ra>
